<compile_context>
chip_gen: v7x
topology: tpu7x:2x2x1
jax: 0.10.0
libtpu: 0.0.40
codegen_flags: <defaults>
</compile_context>

<pallas_src>
import numpy as np
import jax
import jax.numpy as jnp
from jax.experimental import pallas as pl
from jax.experimental.pallas import tpu as pltpu


def _round_up(x, m):
    return ((x + m - 1) // m) * m


def _conv_matmul_kernel(a_ref, w_ref, b_ref, o_ref):
    # One M-tile: A[TM, KDp] @ W[KDp, Cp] + b[1, Cp] on the MXU with f32 accumulation.
    acc = jnp.dot(a_ref[...], w_ref[...], preferred_element_type=jnp.float32)
    o_ref[...] = (acc + b_ref[...]).astype(o_ref.dtype)


def volcanoes_conv(x_nchw, weight, bias, kernel, stride=2):
    """Forward of VolcanoesConv: Conv2d(ch_in, ch_out, kernel, stride=2, padding=kernel//2)."""
    N, Cin, H, W = x_nchw.shape
    Cout = weight.shape[0]
    pad = kernel // 2
    Ho = (H + 2 * pad - kernel) // stride + 1
    Wo = (W + 2 * pad - kernel) // stride + 1

    # --- glue: pad + im2col (row order (n,ho,wo), col order (ci,kh,kw) to match OIHW) ---
    # TODO(synk): fuse patch extraction into the kernel (PrefetchScalarGridSpec + row-offset
    # gather) to avoid materializing the K*K-times-larger A in HBM; for now im2col is XLA-side.
    xp = jnp.pad(x_nchw, ((0, 0), (0, 0), (pad, pad), (pad, pad)))
    patches = [
        xp[:, :, kh:kh + stride * Ho:stride, kw:kw + stride * Wo:stride]
        for kh in range(kernel) for kw in range(kernel)
    ]                                                     # each [N, Cin, Ho, Wo]
    p = jnp.stack(patches, axis=2)                        # [N, Cin, K*K, Ho, Wo]
    a = p.transpose(0, 3, 4, 1, 2).reshape(N * Ho * Wo, Cin * kernel * kernel)

    w_flat = weight.reshape(Cout, Cin * kernel * kernel).T   # [KD, Cout]
    b_row = bias.reshape(1, Cout)

    M, KD = a.shape

    # --- lane-dense padding: KD and Cout up to multiples of 128 (zero padding is exact) ---
    KDp = _round_up(KD, 128)
    Cp = _round_up(Cout, 128)

    # --- M tiling: big enough for pipelining, small enough for v7x's 64 MiB VMEM;
    #     ensure >= 2 grid steps when M allows so both TCs get work on v7x.
    TM = min(512, _round_up(M, 8))
    if M > 8:
        TM = min(TM, _round_up(pl.cdiv(M, 2), 8))
    TM = max(8, TM)
    Mp = _round_up(M, TM)
    grid_m = Mp // TM
    # VMEM footprint (double-buffered A + out tiles, resident W/bias):
    #   2*(TM*KDp + TM*Cp)*4B + KDp*Cp*4B  ~<= 1.1 MiB at TM=512 -> fits every chip's default.

    a_p = jnp.zeros((Mp, KDp), a.dtype).at[:M, :KD].set(a)
    w_p = jnp.zeros((KDp, Cp), w_flat.dtype).at[:KD, :Cout].set(w_flat)
    b_p = jnp.zeros((1, Cp), b_row.dtype).at[:, :Cout].set(b_row)

    out_p = pl.pallas_call(
        _conv_matmul_kernel,
        out_shape=jax.ShapeDtypeStruct((Mp, Cp), x_nchw.dtype),
        grid=(grid_m,),
        in_specs=[
            pl.BlockSpec((TM, KDp), lambda i: (i, 0)),   # A tile streams over M
            pl.BlockSpec((KDp, Cp), lambda i: (0, 0)),   # W resident across the grid
            pl.BlockSpec((1, Cp), lambda i: (0, 0)),     # bias resident across the grid
        ],
        out_specs=pl.BlockSpec((TM, Cp), lambda i: (i, 0)),
        compiler_params=pltpu.CompilerParams(
            dimension_semantics=("parallel",),
        ),
    )(a_p, w_p, b_p)

    out_flat = out_p[:M, :Cout]
    return out_flat.reshape(N, Ho, Wo, Cout).transpose(0, 3, 1, 2)


if __name__ == "__main__":
    # Module hyperparameters (small, consistent with the forward)
    ch_in, ch_out, kernel = 4, 8, 3
    N, H, W = 2, 16, 16
    pad = kernel // 2

    key = jax.random.PRNGKey(0)
    kx, kw, kb = jax.random.split(key, 3)

    # Deterministic parameter init (PyTorch Conv2d default: U(-1/sqrt(fan_in), 1/sqrt(fan_in)))
    fan_in = ch_in * kernel * kernel
    bound = 1.0 / np.sqrt(fan_in)
    weight = jax.random.uniform(kw, (ch_out, ch_in, kernel, kernel),
                                minval=-bound, maxval=bound, dtype=jnp.float32)
    bias = jax.random.uniform(kb, (ch_out,), minval=-bound, maxval=bound, dtype=jnp.float32)

    x = jax.random.normal(kx, (N, ch_in, H, W), dtype=jnp.float32)

    out = volcanoes_conv(x, weight, bias, kernel, stride=2)
    out = jax.block_until_ready(out)

    # Reference check against XLA's conv (same semantics as torch.nn.Conv2d NCHW/OIHW)
    ref = jax.lax.conv_general_dilated(
        x, weight, window_strides=(2, 2),
        padding=[(pad, pad), (pad, pad)],
        dimension_numbers=("NCHW", "OIHW", "NCHW"),
    ) + bias[None, :, None, None]
    ref = jax.block_until_ready(ref)

    assert out.shape == (N, ch_out, H // 2, W // 2), out.shape
    np.testing.assert_allclose(np.asarray(out), np.asarray(ref), rtol=1e-5, atol=1e-5)

    print("KERNEL_OK")
</pallas_src>

<mosaic_0001>
module attributes {stable_mosaic.version = 11 : i64} {
  func.func @_conv_matmul_kernel(%arg0: i32, %arg1: memref<64x128xf32, #tpu.memory_space<vmem>>, %arg2: memref<128x128xf32, #tpu.memory_space<vmem>>, %arg3: memref<1x128xf32, #tpu.memory_space<vmem>>, %arg4: memref<64x128xf32, #tpu.memory_space<vmem>>) attributes {dimension_semantics = [#tpu.dimension_semantics<parallel>], iteration_bounds = array<i64: 2>, scalar_prefetch = 0 : i64, scratch_operands = 0 : i64, tpu.core_type = #tpu.core_type<tc>, window_params = [{transform_indices = @transform_0, window_bounds = array<i64: 64, 128>}, {pipeline_mode = #tpu.pipeline_mode<synchronous>, transform_indices = @transform_1, window_bounds = array<i64: 128, 128>}, {pipeline_mode = #tpu.pipeline_mode<synchronous>, transform_indices = @transform_2, window_bounds = array<i64: 1, 128>}, {transform_indices = @transform_3, window_bounds = array<i64: 64, 128>}]} {
    %c0 = arith.constant 0 : index
    %c0_0 = arith.constant 0 : index
    %0 = vector.load %arg1[%c0, %c0_0] : memref<64x128xf32, #tpu.memory_space<vmem>>, vector<64x128xf32>
    %c0_1 = arith.constant 0 : index
    %c0_2 = arith.constant 0 : index
    %1 = vector.load %arg2[%c0_1, %c0_2] : memref<128x128xf32, #tpu.memory_space<vmem>>, vector<128x128xf32>
    %cst = arith.constant dense<0.000000e+00> : vector<64x128xf32>
    %2 = tpu.matmul %0, %1, %cst {dimension_numbers = #tpu.dot_dimension_numbers<[1], [0], [0], [1], [0, 0, 1, 1], [], []>} : vector<64x128xf32>, vector<128x128xf32>, vector<64x128xf32> -> vector<64x128xf32>
    %c0_3 = arith.constant 0 : index
    %c0_4 = arith.constant 0 : index
    %3 = vector.load %arg3[%c0_3, %c0_4] : memref<1x128xf32, #tpu.memory_space<vmem>>, vector<1x128xf32>
    %4 = vector.broadcast %3 : vector<1x128xf32> to vector<64x128xf32>
    %5 = arith.addf %2, %4 : vector<64x128xf32>
    %c0_5 = arith.constant 0 : index
    %c0_6 = arith.constant 0 : index
    %6 = vector.load %arg4[%c0_5, %c0_6] : memref<64x128xf32, #tpu.memory_space<vmem>>, vector<64x128xf32>
    tpu.vector_store %arg4[%c0_5, %c0_6], %5 {strides = array<i32>} : memref<64x128xf32, #tpu.memory_space<vmem>>, vector<64x128xf32>,
    return
  }
  func.func @transform_0(%arg0: i32) -> (i32, i32) {
    %c0_i32 = arith.constant 0 : i32
    %c0_i32_0 = arith.constant 0 : i32
    return %arg0, %c0_i32 : i32, i32
  }
  func.func @transform_1(%arg0: i32) -> (i32, i32) {
    %c0_i32 = arith.constant 0 : i32
    %c0_i32_0 = arith.constant 0 : i32
    %c0_i32_1 = arith.constant 0 : i32
    return %c0_i32, %c0_i32_0 : i32, i32
  }
  func.func @transform_2(%arg0: i32) -> (i32, i32) {
    %c0_i32 = arith.constant 0 : i32
    %c0_i32_0 = arith.constant 0 : i32
    %c0_i32_1 = arith.constant 0 : i32
    return %c0_i32, %c0_i32_0 : i32, i32
  }
  func.func @transform_3(%arg0: i32) -> (i32, i32) {
    %c0_i32 = arith.constant 0 : i32
    %c0_i32_0 = arith.constant 0 : i32
    return %arg0, %c0_i32 : i32, i32
  }
}

</mosaic_0001>

<bundles_post_ra>
// kernel: tpu_custom_call.1
= control target key start
LH: loop header
LB: loop body
LE: loop exit
PB: predicated region body
PF: predicated region fallthrough
CT: control target
= control target key end

     0   :  { %8 = vsyncpa [#allocation3], 0  ;;  %s1024_s0 = inlined_call_operand.hbm [shape: f32[128,128], index: 0, kind: input, shape index: {}]   ;;  %s1025_s1 = inlined_call_operand.hbm [shape: f32[128,128], index: 1, kind: input, shape index: {}]   ;;  %s1026_s2 = inlined_call_operand.vmem [shape: f32[1,128], index: 2, kind: input, shape index: {}]   ;;  %s1027_s3 = inlined_call_operand.hbm [shape: f32[128,128], index: 3, kind: output, shape index: {}]  }
   0x1   :  { %10 = vsyncpa [#allocation3 + $0x1], 0 }
   0x2   :  { %11 = vsyncpa [#allocation6], 0 }
   0x3   :  { %12 = vsyncpa [#allocation4], 0 }
   0x4   :  { %14 = vsyncpa [#allocation4 + $0x1], 0  ;;  %s800_s12 = smov 0   ;;  %s802_s13 = smov 0  }
   0x5   :  { %s804_s14 = smov 0   ;;  %s806_s15 = smov 0  }
   0x6 LB: > { %s821_s16 = sadd.s32 4294967295, %s771_s15   ;;  %s447_s17 = sadd.s32 4294967294, %s771_s15   ;;  %s771_s15 = sphi %s806_s15, %s1047_s15   ;;  %s767_s14 = sphi %s804_s14, %s1046_s14   ;;  %s763_s13 = sphi %s802_s13, %s1045_s13   ;;  %s759_s12 = sphi %s800_s12, %s1044_s12  }
   0x7   : > { %p40_p0 = scmp.ne.s32.totalorder %s763_s13, %s759_s12  ;;  %p1028_p1 = scmp.eq.s32.totalorder %s821_s16, 0 }
   0x8   : > { %p112_p3 = scmp.eq.s32.totalorder %s447_s17, 1  ;;  %p448_p5 = scmp.ge.s32.totalorder %s771_s15, 1 }
   0x9   : > { %p830_p4 = por %p1028_p1, %p40_p0  ;;  %p119_p7 = scmp.lt.s32.totalorder %s771_s15, 3 }
   0xa   : > { %p835_p6 = por %p112_p3, %p40_p0  ;;  %s773_s21 = smov [#allocation5]  }
   0xb   : > { %s1031_s18 = scalar_select %p830_p4, 1, 0 }
   0xc   : > { %s1032_s19 = scalar_select %p835_p6, 1, 0 }
   0xd   : > { %p840_p8 = pnand %p448_p5, %p119_p7  ;;  %s131_s22 = sshll.u32 %s773_s21, 4  ;;  %s844_s22 = int_to_ptr.vmem [resolvable:$true] %s131_s22 }
   0xe   : > { %s856_s24 = sadd.s32 1, %s771_s15   ;;  %s27_s25 = sadd.s32 1, %s767_s14 }
   0xf   : > { %s1033_s20 = scalar_select %p840_p8, 1, 0 }
  0x10   : > { %p590_p9 = pneg %p840_p8  ;;  %s24_s26 = ssub.s32 %s771_s15, %s856_s24 }
  0x11   : > { %s643_s29 = scalar_lea.hbm %s1025_s1, 2048 }
  0x12   : > { %p851_p11 = pnand %p590_p9, %p1028_p1  ;;  %p644_p12 = scmp.ne.s32.totalorder %s1025_s1, %s643_s29 }
  0x13   : > { %p650_p5 = scmp.lt.u32.totalorder %s643_s29, %s1025_s1 }
  0x14   : > { %p645_p13 = pneg %p851_p11 }
  0x16   : > { %p646_p0 = pnand %p645_p13, %p644_p12 }
  0x18   : > { %p647_p3 = pneg %p646_p0 }
  0x1a   : > { %p652_p7 = pnand %p650_p5, %p647_p3 }
  0x1c   : > { %655 = shalt.err (!%p652_p7)
}
  0x1d   : > { %s656_s7 = scalar_lea.vmem %s844_s22, 2048  ;;  %p664_p2 = scmp.lt.s32.totalorder %s844_s22, %s844_s22 }
  0x1e   : > { %p657_p9 = scmp.ne.s32.totalorder %s844_s22, %s656_s7  ;;  %p665_p6 = scmp.lt.s32.totalorder %s656_s7, %s656_s7 }
  0x20   : > { %p659_p10 = pnand %p657_p9, %p645_p13  ;;  %p666_p4 = por %p665_p6, %p664_p2 }
  0x22   : > { %p660_p1 = pneg %p659_p10 }
  0x24   : > { %p667_p8 = pnand %p666_p4, %p660_p1 }
  0x26   : > { %670 = shalt.err (!%p667_p8)
}
  0x27   : > { %s774_s8 = smov 128   ;;  %s775_s9 = smov 8  }
  0x28   : > { %593 = dma.hbm_to_vmem [thread:$0]  (!%p851_p11), %s1025_s1, 2048, %s844_s22, [#allocation6], %s774_s8, %s774_s8, %s775_s9  }
  0x29   : > { %p25_p1 = scmp.eq.s32.totalorder %s24_s26, 0  ;;  %p34_p2 = scmp.ne.s32.totalorder %s767_s14, %s763_s13 }
  0x2a   : > { %p35_p4 = scmp.eq.s32.totalorder %s771_s15, 0  ;;  %p603_p6 = scmp.lt.s32.totalorder %s771_s15, 2 }
  0x2b   : > { %s890_s17 = scalar_select %p25_p1, %s767_s14, %s27_s25  }
  0x2c   : > { %p36_p8 = por %p35_p4, %p34_p2  ;;  %p1035_p10 = scmp.eq.s32.totalorder %s821_s16, 1 }
  0x2d   : > { %s148_s23 = sand.u32 1, %s767_s14   ;;  %s464_s27 = sshll.u32 %s771_s15, 10 }
  0x2e   : > { %p894_p12 = por %p1035_p10, %p34_p2  ;;  %s451_s28 = sshll.u32 %s148_s23, 6 }
  0x2f   : > { %s903_s4 = scalar_lea.hbm %s1024_s0, %s464_s27  ;;  %s152_s22 = scalar_lea.vmem [#allocation2], %s451_s28 }
  0x30   : > { %s159_s25 = sshll.u32 %s152_s22, 4  ;;  %p905_p11 = pnand %p603_p6, %p36_p8  ;;  %s909_s25 = int_to_ptr.vmem [resolvable:$true] %s159_s25 }
  0x31   : > { %s911_s5 = scalar_lea.sflag [#allocation3], %s148_s23  ;;  %s671_s6 = scalar_lea.hbm %s903_s4, 1024 }
  0x32   : > { %p672_p13 = scmp.ne.s32.totalorder %s903_s4, %s671_s6  ;;  %p673_p0 = pneg %p905_p11 }
  0x33   : > { %s676_s11 = scalar_lea.hbm %s1024_s0, 2048  ;;  %p677_p7 = scmp.lt.u32.totalorder %s903_s4, %s1024_s0 }
  0x34   : > { %p674_p3 = pnand %p673_p0, %p672_p13  ;;  %p678_p9 = scmp.lt.u32.totalorder %s676_s11, %s671_s6 }
  0x35   : > { %p680_p2 = scmp.lt.u32.totalorder %s671_s6, %s903_s4 }
  0x36   : > { %p675_p5 = pneg %p674_p3  ;;  %p679_p1 = por %p678_p9, %p677_p7 }
  0x38   : > { %p681_p4 = por %p680_p2, %p679_p1 }
  0x3a   : > { %p682_p6 = pnand %p681_p4, %p675_p5 }
  0x3c   : > { %685 = shalt.err (!%p682_p6)
}
  0x3d   : > { %s686_s23 = scalar_lea.vmem %s909_s25, 1024  ;;  %s776_s29 = smov [#allocation2]  }
  0x3e   : > { %p687_p8 = scmp.ne.s32.totalorder %s909_s25, %s686_s23  ;;  %s691_s30 = sshll.u32 %s776_s29, 4  ;;  %s692_s30 = int_to_ptr.vmem [resolvable:$false] %s691_s30 }
  0x3f   : > { %s693_s22 = scalar_lea.vmem %s692_s30, 2048  ;;  %p694_p3 = scmp.lt.s32.totalorder %s909_s25, %s692_s30 }
  0x40   : > { %p689_p10 = pnand %p687_p8, %p673_p0  ;;  %p695_p7 = scmp.lt.s32.totalorder %s693_s22, %s686_s23 }
  0x42   : > { %p690_p13 = pneg %p689_p10  ;;  %p696_p9 = por %p695_p7, %p694_p3 }
  0x44   : > { %p697_p1 = pnand %p696_p9, %p690_p13 }
  0x46   : > { %700 = shalt.err (!%p697_p1)
}
  0x47   : > { %597 = dma.hbm_to_vmem [thread:$0]  (!%p905_p11), %s903_s4, 1024, %s909_s25, %s911_s5, %s774_s8, %s774_s8, %s775_s9  }
  0x48   : > { %p1038_p0 = scmp.ne.s32.totalorder %s1033_s20, 0 }
  0x49   : > { %s945_s6 = sand.u32 (!%p1038_p0), 1, %s763_s13   ;;  %p1039_p5 = scmp.ne.s32.totalorder (!%p1038_p0), %s1031_s18, 0 }
  0x4a   : > { %171 = sbr.rel (%p1038_p0) target bundleno = 354 (0x162), region = 32  ;;  %s455_s7 = sshll.u32 (!%p1038_p0), %s945_s6, 6 }
  0x4b   : > { %s174_s10 = scalar_lea.sflag (!%p1038_p0), [#allocation3], %s945_s6  ;;  %s951_s26 = scalar_lea.vmem (!%p1038_p0), [#allocation2], %s455_s7 }
  0x51   : > { %746 = dma.done.wait (%p1039_p5), %s174_s10, 1024  }
  0x52   : > { %748 = vsyncadd (%p1039_p5), %s174_s10, 4294966272  ;;  %p1040_p11 = scmp.eq.s32.totalorder %s821_s16, 0 }
  0x54   : > { %750 = dma.done.wait (%p1040_p11), [#allocation6], 2048   ;;  %p1041_p2 = pmov %p1040_p11 }
  0x55   : > { %v214_v0 = vld [vmem:[#allocation5] sm:$0xff]  ;;  %v215_v1 = vld [vmem:[#allocation5 + $0x8] sm:$0xff]  ;;  %v216_v2 = vld [vmem:[#allocation5 + $0x10] sm:$0xff]  ;;  %s203_s8 = scalar_lea.vmem [#allocation7], %s455_s7  ;;  %s465_s4 = sshll.u32 %s821_s16, 10 }
  0x56   : > { %752 = vsyncadd (%p1041_p2), [#allocation6], 4294965248  ;;  %v534_v3 = vpack.c.bf16 %v215_v1, %v214_v0  ;;  %v217_v4 = vld [vmem:[#allocation5 + $0x18] sm:$0xff]  ;;  %v218_v6 = vld [vmem:[#allocation5 + $0x20] sm:$0xff]  ;;  %s364_s9 = sshll.u32 %s203_s8, 4  ;;  %s980_s16 = scalar_lea.hbm %s1027_s3, %s465_s4  ;;  %s975_s9 = int_to_ptr.vmem [resolvable:$true] %s364_s9 }
  0x57   : > { %v538_v5 = vpack.c.bf16 %v217_v4, %v216_v2  ;;  %v219_v7 = vld [vmem:[#allocation5 + $0x28] sm:$0xff]  ;;  %v206_v9 = vld [vmem:[%s951_s26] sm:$0xff]  ;;  %v220_v11 = vld [vmem:[#allocation5 + $0x30] sm:$0xff]  ;;  %s351_s11 = scalar_lea.sflag [#allocation4], %s945_s6  ;;  %s701_s27 = scalar_lea.vmem %s975_s9, 1024 }
  0x58   : > { %535 = vmatprep.subr.bf16.mxu0 %v534_v3  ;;  %566 = vmatprep.subr.bf16.mxu1 %v534_v3  ;;  %v542_v8 = vpack.c.bf16 %v219_v7, %v218_v6  ;;  %v210_v10 = vld [vmem:[%s951_s26 + $0x20] sm:$0xff]  ;;  %v221_v12 = vld [vmem:[#allocation5 + $0x38] sm:$0xff]  ;;  %v223_v15 = vld [vmem:[#allocation5 + $0x48] sm:$0xff]  ;;  %p702_p4 = scmp.ne.s32.totalorder %s975_s9, %s701_s27  ;;  %s777_s28 = smov [#allocation7]  }
  0x59   : > { %537 = vmatpush3.bf16.msra.mxu0 %v534_v3  ;;  %574 = vmatpush3.bf16.msra.mxu1 %v534_v3  ;;  %v546_v13 = vpack.c.bf16 %v221_v12, %v220_v11  ;;  %v222_v14 = vld [vmem:[#allocation5 + $0x40] sm:$0xff]  ;;  %v224_v17 = vld [vmem:[#allocation5 + $0x50] sm:$0xff]  ;;  %v225_v18 = vld [vmem:[#allocation5 + $0x58] sm:$0xff]  ;;  %s705_s23 = sshll.u32 %s777_s28, 4  ;;  %s706_s23 = int_to_ptr.vmem [resolvable:$false] %s705_s23 }
  0x5a   : > { %539 = vmatprep.subr.bf16.mxu0 %v538_v5  ;;  %567 = vmatprep.subr.bf16.mxu1 %v538_v5  ;;  %v550_v16 = vpack.c.bf16 %v223_v15, %v222_v14  ;;  %v554_v19 = vpack.c.bf16 %v225_v18, %v224_v17  ;;  %v226_v20 = vld [vmem:[#allocation5 + $0x60] sm:$0xff]  ;;  %v227_v21 = vld [vmem:[#allocation5 + $0x68] sm:$0xff]  ;;  %v228_v23 = vld [vmem:[#allocation5 + $0x70] sm:$0xff]  ;;  %p703_p6 = pnand %p702_p4, %p894_p12  ;;  %s707_s29 = scalar_lea.vmem %s706_s23, 2048 }
  0x5b   : > { %522 = vmatprep.mubr.f32.mxu0 %v206_v9  ;;  %528 = vmatprep.mubr.f32.mxu1 %v210_v10  ;;  %v558_v22 = vpack.c.bf16 %v227_v21, %v226_v20  ;;  %v229_v24 = vld [vmem:[#allocation5 + $0x78] sm:$0xff]  ;;  %v207_v26 = vld [vmem:[%s951_s26 + $0x8] sm:$0xff]  ;;  %v208_v28 = vld [vmem:[%s951_s26 + $0x10] sm:$0xff]  ;;  %p708_p10 = scmp.lt.s32.totalorder %s975_s9, %s706_s23  ;;  %p709_p13 = scmp.lt.s32.totalorder %s707_s29, %s701_s27 }
  0x5c   : > { %v562_v25 = vpack.c.bf16 %v229_v24, %v228_v23  ;;  %v211_v27 = vld [vmem:[%s951_s26 + $0x28] sm:$0xff]  ;;  %v212_v29 = vld [vmem:[%s951_s26 + $0x30] sm:$0xff]  ;;  %v209_v30 = vld [vmem:[%s951_s26 + $0x18] sm:$0xff]  ;;  %p704_p8 = pneg %p703_p6 }
  0x5d   : > { %541 = vmatpush3.bf16.msra.mxu0 %v538_v5  ;;  %575 = vmatpush3.bf16.msra.mxu1 %v538_v5  ;;  %v213_v31 = vld [vmem:[%s951_s26 + $0x38] sm:$0xff]  ;;  %v458_v32 = vld [vmem:[%s1026_s2] ss:$0 sm:$0xff]  ;;  %p710_p3 = por %p709_p13, %p708_p10 }
  0x5e   : > { %543 = vmatprep.subr.bf16.mxu0 %v542_v8  ;;  %568 = vmatprep.subr.bf16.mxu1 %v542_v8 }
  0x5f   : > { %p711_p7 = pnand %p710_p3, %p704_p8 }
  0x61   : > { %545 = vmatpush3.bf16.msra.mxu0 %v542_v8  ;;  %576 = vmatpush3.bf16.msra.mxu1 %v542_v8 }
  0x62   : > { %547 = vmatprep.subr.bf16.mxu0 %v546_v13  ;;  %569 = vmatprep.subr.bf16.mxu1 %v546_v13 }
  0x65   : > { %549 = vmatpush3.bf16.msra.mxu0 %v546_v13  ;;  %577 = vmatpush3.bf16.msra.mxu1 %v546_v13 }
  0x66   : > { %551 = vmatprep.subr.bf16.mxu0 %v550_v16  ;;  %570 = vmatprep.subr.bf16.mxu1 %v550_v16 }
  0x69   : > { %553 = vmatpush3.bf16.msra.mxu0 %v550_v16  ;;  %578 = vmatpush3.bf16.msra.mxu1 %v550_v16 }
  0x6a   : > { %555 = vmatprep.subr.bf16.mxu0 %v554_v19  ;;  %571 = vmatprep.subr.bf16.mxu1 %v554_v19 }
  0x6d   : > { %557 = vmatpush3.bf16.msra.mxu0 %v554_v19  ;;  %579 = vmatpush3.bf16.msra.mxu1 %v554_v19 }
  0x6e   : > { %559 = vmatprep.subr.bf16.mxu0 %v558_v22  ;;  %572 = vmatprep.subr.bf16.mxu1 %v558_v22 }
  0x71   : > { %561 = vmatpush3.bf16.msra.mxu0 %v558_v22  ;;  %580 = vmatpush3.bf16.msra.mxu1 %v558_v22 }
  0x72   : > { %563 = vmatprep.subr.bf16.mxu0 %v562_v25  ;;  %573 = vmatprep.subr.bf16.mxu1 %v562_v25 }
  0x75   : > { %565 = vmatpush3.bf16.msra.mxu0 %v562_v25  ;;  %581 = vmatpush3.bf16.msra.mxu1 %v562_v25 }
  0x78   : > { %523 = vmatmul.mubr.f32.vlgmr.msra.gmra.mrb[0].mxu0 %v207_v26  ;;  %529 = vmatmul.mubr.f32.vlgmr.msra.gmra.mrb[0].mxu1 %v211_v27 }
  0x79   : > { %525 = vmatprep.mubr.f32.mxu0 %v208_v28  ;;  %531 = vmatprep.mubr.f32.mxu1 %v212_v29 }
  0x7c   : > { %526 = vmatmul.mubr.f32.gmra.mrb[2].mxu0 %v209_v30  ;;  %532 = vmatmul.mubr.f32.gmra.mrb[2].mxu1 %v213_v31 }
 0x14b   : > { %v524_v33 = vpop.f32.mrb[0].mxu0  ;;  %v530_v34 = vpop.f32.mrb[0].mxu1 }
 0x14c   : > { %v309_v35 = vadd.f32 %v524_v33, %v458_v32  ;;  %v329_v36 = vadd.f32 %v530_v34, %v458_v32  ;;  %v303_v37 = vpop.f32.mrb[1].mxu0  ;;  %v323_v38 = vpop.f32.mrb[1].mxu1 }
 0x14d   : > { %v304_v39 = vadd.f32 %v458_v32, %v303_v37  ;;  %v324_v40 = vadd.f32 %v458_v32, %v323_v38 }
 0x14e   : > { %343 = vst [vmem:[%s203_s8 + $0x8] sm:$0xff] %v309_v35  ;;  %347 = vst [vmem:[%s203_s8 + $0x28] sm:$0xff] %v329_v36 }
 0x14f   : > { %342 = vst [vmem:[%s203_s8] sm:$0xff] %v304_v39  ;;  %346 = vst [vmem:[%s203_s8 + $0x20] sm:$0xff] %v324_v40  ;;  %v527_v41 = vpop.f32.mrb[2].mxu0  ;;  %v533_v42 = vpop.f32.mrb[2].mxu1 }
 0x150   : > { %v319_v43 = vadd.f32 %v527_v41, %v458_v32  ;;  %v339_v44 = vadd.f32 %v533_v42, %v458_v32  ;;  %v313_v45 = vpop.f32.mrb[3].mxu0  ;;  %v333_v46 = vpop.f32.mrb[3].mxu1 }
 0x151   : > { %v314_v47 = vadd.f32 %v458_v32, %v313_v45  ;;  %v334_v48 = vadd.f32 %v458_v32, %v333_v46 }
 0x152   : > { %345 = vst [vmem:[%s203_s8 + $0x18] sm:$0xff] %v319_v43  ;;  %349 = vst [vmem:[%s203_s8 + $0x38] sm:$0xff] %v339_v44 }
 0x153   : > { %344 = vst [vmem:[%s203_s8 + $0x10] sm:$0xff] %v314_v47  ;;  %348 = vst [vmem:[%s203_s8 + $0x30] sm:$0xff] %v334_v48 }
 0x154   : > { %714 = shalt.err (!%p711_p7)
}
 0x155   : > { %s715_s30 = scalar_lea.hbm %s980_s16, 1024  ;;  %s719_s10 = scalar_lea.hbm %s1027_s3, 2048 }
 0x156   : > { %p716_p9 = scmp.ne.s32.totalorder %s980_s16, %s715_s30  ;;  %p720_p5 = scmp.lt.u32.totalorder %s980_s16, %s1027_s3 }
 0x157   : > { %p721_p11 = scmp.lt.u32.totalorder %s719_s10, %s715_s30  ;;  %p723_p4 = scmp.lt.u32.totalorder %s715_s30, %s980_s16 }
 0x158   : > { %p717_p1 = pnand %p716_p9, %p894_p12 }
 0x159   : > { %p722_p2 = por %p721_p11, %p720_p5 }
 0x15a   : > { %p718_p0 = pneg %p717_p1 }
 0x15b   : > { %p724_p6 = por %p723_p4, %p722_p2 }
 0x15d   : > { %p725_p8 = pnand %p724_p6, %p718_p0 }
 0x15f   : > { %728 = shalt.err (!%p725_p8)
}
 0x160   : > { %s778_s20 = smov 128   ;;  %s779_s8 = smov 8  }
 0x161   : > { %588 = dma.vmem_to_hbm [thread:$0]  (%p894_p12), %s975_s9, 1024, %s980_s16, %s351_s11, %s778_s20, %s778_s20, %s779_s8  }
 0x162 PF: > { %s379_s4 = sand.u32 1, %s759_s12   ;;  %p1042_p10 = scmp.ne.s32.totalorder %s1032_s19, 0 }
 0x163   : > { %p1043_p13 = scmp.ge.s32.totalorder %s771_s15, 2  ;;  %s380_s25 = scalar_lea.sflag [#allocation4], %s379_s4 }
 0x165   : > { %p599_p3 = pnand %p1043_p13, %p1042_p10 }
 0x167   : > { %754 = dma.done.wait (!%p599_p3), %s380_s25, 1024  }
 0x168   : > { %756 = vsyncadd (!%p599_p3), %s380_s25, 4294966272  ;;  %p17_p7 = scmp.ge.s32.totalorder %s856_s24, 4   ;;  %s1044_s12 = smov %s763_s13 }
 0x169   : > { %s1045_s13 = smov %s767_s14  ;;  %s1046_s14 = smov %s890_s17 }
 0x16a   : > { %s1047_s15 = smov %s856_s24  ;;  %19 = sbr.rel (!%p17_p7) target bundleno = 6 (0x6), region = 81 }
 0x171   :  { %385 = vsyncpa [#allocation3], 1 }
 0x172   :  { %387 = vsyncpa [#allocation3 + $0x1], 1 }
 0x173   :  { %388 = vsyncpa [#allocation6], 1 }
 0x174   :  { %389 = vsyncpa [#allocation4], 1 }
 0x175   :  { %391 = vsyncpa [#allocation4 + $0x1], 1 }

</bundles_post_ra>
